<compile_context>
chip_gen: v5e
topology: v5e:2x2
jax: 0.10.0
libtpu: 0.0.40
codegen_flags: <defaults>
</compile_context>

<pallas_src>
import functools
import math

import jax
import jax.numpy as jnp
import numpy as np
from jax.experimental import pallas as pl
from jax.experimental.pallas import tpu as pltpu


# --------------------------------- kernel -----------------------------------

def self_attention_kernel(x_ref, wqkv_ref, bqkv_ref, wo_ref, bo_ref, out_ref,
                          *, n_head):
    # One batch element per grid step: x_ref is (L, D).
    L, D = x_ref.shape
    hd = D // n_head

    # Fused QKV projection (bf16 operands, f32 accumulation).  The 1/sqrt(hd)
    # attention scale is already folded into the Q columns of wqkv / bqkv.
    x = x_ref[...].astype(jnp.bfloat16)                          # (L, D)
    qkv = jnp.dot(x, wqkv_ref[...],
                  preferred_element_type=jnp.float32) + bqkv_ref[...]  # (L, 3D) f32

    # Head-batched q / k / v: (H, L, hd).  Static lane slices + a leading-axis
    # stack; no reshape / transpose of the minor (lane) dimension.
    def split_heads(base):
        return jnp.stack(
            [qkv[:, base + h * hd: base + (h + 1) * hd] for h in range(n_head)],
            axis=0)

    q = split_heads(0).astype(jnp.bfloat16)
    k = split_heads(D).astype(jnp.bfloat16)
    v = split_heads(2 * D).astype(jnp.bfloat16)

    # Scores for all heads of this batch element: (H, L, L), f32 accumulation.
    s = jnp.einsum("hqd,hkd->hqk", q, k, preferred_element_type=jnp.float32)

    # Softmax in fp32 with max subtraction; reciprocal on the EUP.
    m = jnp.max(s, axis=-1, keepdims=True)
    e = jnp.exp(s - m)
    denom = jnp.sum(e, axis=-1, keepdims=True)
    p = (e * pl.reciprocal(denom, approx=True)).astype(jnp.bfloat16)

    # Weighted values for all heads at once: (H, L, hd), f32.
    o = jnp.einsum("hqk,hkd->hqd", p, v, preferred_element_type=jnp.float32)

    # Per-head accumulating output projection (replaces concat + single dot):
    # y = sum_h o[h] @ wo[h] + bo, with wo pre-laid-out as (H, hd, D).
    wo = wo_ref[...]                                             # (H, hd, D) bf16
    acc = jnp.zeros((L, D), dtype=jnp.float32)
    for h in range(n_head):
        acc = acc + jnp.dot(o[h].astype(jnp.bfloat16), wo[h],
                            preferred_element_type=jnp.float32)
    y = acc + bo_ref[...]
    out_ref[...] = y.astype(out_ref.dtype)


# -------------------------------- wrapper ------------------------------------

def prepare_params(wqkv_w, wqkv_b, wo_w, wo_b, *, n_head):
    """Convert PyTorch-layout params to kernel layout (one-time, free).

    Torch layout: wqkv_w (3D, D), wqkv_b (3D,), wo_w (D, D), wo_b (D,).
    * 1/sqrt(head_dim) is folded into the Q columns of wqkv / bqkv.
    * wo is pre-split per head to (H, hd, D) so the kernel can accumulate
      per-head output projections without a lane-minor concat.
    * MXU weight operands are stored in bf16; biases stay fp32.
    """
    three_d, d = wqkv_w.shape
    assert three_d == 3 * d and d % n_head == 0
    hd = d // n_head
    scale = 1.0 / math.sqrt(hd)

    w = wqkv_w.T                                   # (D, 3D)
    b = wqkv_b[None, :]                            # (1, 3D)
    w = jnp.concatenate([w[:, :d] * scale, w[:, d:]], axis=1)
    b = jnp.concatenate([b[:, :d] * scale, b[:, d:]], axis=1)

    wo_h = wo_w.T.reshape(n_head, hd, d)           # (H, hd, D): rows of wo_w.T
                                                   # are head-major, same as the
                                                   # torch head-merge order.
    return {
        "wqkv": w.astype(jnp.bfloat16),
        "bqkv": b.astype(jnp.float32),
        "wo": wo_h.astype(jnp.bfloat16),
        "bo": wo_b[None, :].astype(jnp.float32),
    }


def self_attention_custom(x, params, *, n_head):
    """x: (seqlen, bsz, dim) exactly like the PyTorch module; same-shape output."""
    L, B, D = x.shape
    hd = D // n_head

    # Batch-first, mirroring the module's x.transpose(0, 1).
    xb = jnp.transpose(x, (1, 0, 2))               # (B, L, D)

    kernel = functools.partial(self_attention_kernel, n_head=n_head)

    y = pl.pallas_call(
        kernel,
        out_shape=jax.ShapeDtypeStruct((B, L, D), jnp.float32),
        grid=(B,),
        in_specs=[
            pl.BlockSpec((None, L, D), lambda b: (b, 0, 0)),        # x (squeeze B)
            pl.BlockSpec((D, 3 * D), lambda b: (0, 0)),             # wqkv
            pl.BlockSpec((1, 3 * D), lambda b: (0, 0)),             # bqkv
            pl.BlockSpec((n_head, hd, D), lambda b: (0, 0, 0)),     # wo per-head
            pl.BlockSpec((1, D), lambda b: (0, 0)),                 # bo
        ],
        out_specs=pl.BlockSpec((None, L, D), lambda b: (b, 0, 0)),
        compiler_params=pltpu.CompilerParams(
            dimension_semantics=("parallel",)),      # shard batch across v7x TCs
    )(xb, params["wqkv"], params["bqkv"], params["wo"], params["bo"])

    # Back to seq-first (seqlen, bsz, dim), as the module returns.
    return jnp.transpose(y, (1, 0, 2))


# ------------------------- pure-JAX reference ---------------------------------

def ref_self_attention(x, wqkv_w, wqkv_b, wo_w, wo_b, *, n_head):
    L, B, D = x.shape
    hd = D // n_head
    xb = jnp.transpose(x, (1, 0, 2))                     # (B, L, D)
    qkv = xb @ wqkv_w.T + wqkv_b
    q, k, v = qkv[..., :D], qkv[..., D:2 * D], qkv[..., 2 * D:]

    def split(t):
        return t.reshape(B, L, n_head, hd).transpose(0, 2, 1, 3)

    qh, kh, vh = split(q), split(k), split(v)
    s = jnp.einsum("bhqd,bhkd->bhqk", qh, kh) / math.sqrt(hd)
    p = jax.nn.softmax(s, axis=-1)
    o = jnp.einsum("bhqk,bhkd->bhqd", p, vh)
    o = o.transpose(0, 2, 1, 3).reshape(B, L, D)
    y = o @ wo_w.T + wo_b
    return jnp.transpose(y, (1, 0, 2))                   # (L, B, D)


# ----------------------------------- main -------------------------------------

if __name__ == "__main__":
    DIM, N_HEAD = 32, 4
    SEQ, BATCH = 8, 2

    key = jax.random.PRNGKey(0)
    k_x, k_w1, k_b1, k_w2, k_b2 = jax.random.split(key, 5)

    x = jax.random.normal(k_x, (SEQ, BATCH, DIM), dtype=jnp.float32)
    wqkv_w = 0.08 * jax.random.normal(k_w1, (3 * DIM, DIM), dtype=jnp.float32)
    wqkv_b = 0.05 * jax.random.normal(k_b1, (3 * DIM,), dtype=jnp.float32)
    wo_w = 0.08 * jax.random.normal(k_w2, (DIM, DIM), dtype=jnp.float32)
    wo_b = 0.05 * jax.random.normal(k_b2, (DIM,), dtype=jnp.float32)

    params = prepare_params(wqkv_w, wqkv_b, wo_w, wo_b, n_head=N_HEAD)

    out = self_attention_custom(x, params, n_head=N_HEAD)
    out = jax.block_until_ready(out)

    ref = ref_self_attention(x, wqkv_w, wqkv_b, wo_w, wo_b, n_head=N_HEAD)
    # Tolerance accounts for bf16 MXU operands and the approximate EUP
    # reciprocal in the softmax (fp32 reference).
    np.testing.assert_allclose(np.asarray(out), np.asarray(ref),
                               rtol=2e-2, atol=2e-2)
    print("KERNEL_OK")
</pallas_src>

<mosaic_0001>
module attributes {stable_mosaic.version = 11 : i64} {
  func.func @self_attention_kernel(%arg0: i32, %arg1: memref<1x8x32xf32, #tpu.memory_space<vmem>>, %arg2: memref<32x96xbf16, #tpu.memory_space<vmem>>, %arg3: memref<1x96xf32, #tpu.memory_space<vmem>>, %arg4: memref<4x8x32xbf16, #tpu.memory_space<vmem>>, %arg5: memref<1x32xf32, #tpu.memory_space<vmem>>, %arg6: memref<1x8x32xf32, #tpu.memory_space<vmem>>) attributes {dimension_semantics = [#tpu.dimension_semantics<parallel>], iteration_bounds = array<i64: 2>, scalar_prefetch = 0 : i64, scratch_operands = 0 : i64, tpu.core_type = #tpu.core_type<tc>, window_params = [{transform_indices = @transform_0, window_bounds = array<i64: 1, 8, 32>}, {pipeline_mode = #tpu.pipeline_mode<synchronous>, transform_indices = @transform_1, window_bounds = array<i64: 32, 96>}, {pipeline_mode = #tpu.pipeline_mode<synchronous>, transform_indices = @transform_2, window_bounds = array<i64: 1, 96>}, {pipeline_mode = #tpu.pipeline_mode<synchronous>, transform_indices = @transform_3, window_bounds = array<i64: 4, 8, 32>}, {pipeline_mode = #tpu.pipeline_mode<synchronous>, transform_indices = @transform_4, window_bounds = array<i64: 1, 32>}, {transform_indices = @transform_5, window_bounds = array<i64: 1, 8, 32>}]} {
    %c0 = arith.constant 0 : index
    %c0_0 = arith.constant 0 : index
    %c0_1 = arith.constant 0 : index
    %0 = vector.load %arg1[%c0, %c0_0, %c0_1] : memref<1x8x32xf32, #tpu.memory_space<vmem>>, vector<1x8x32xf32>
    %1 = vector.shape_cast %0 : vector<1x8x32xf32> to vector<8x32xf32>
    %2 = arith.truncf %1 : vector<8x32xf32> to vector<8x32xbf16>
    %c0_2 = arith.constant 0 : index
    %c0_3 = arith.constant 0 : index
    %3 = vector.load %arg2[%c0_2, %c0_3] : memref<32x96xbf16, #tpu.memory_space<vmem>>, vector<32x96xbf16>
    %cst = arith.constant dense<0.000000e+00> : vector<8x96xf32>
    %4 = tpu.matmul %2, %3, %cst {dimension_numbers = #tpu.dot_dimension_numbers<[1], [0], [0], [1], [0, 0, 1, 1], [], []>} : vector<8x32xbf16>, vector<32x96xbf16>, vector<8x96xf32> -> vector<8x96xf32>
    %c0_4 = arith.constant 0 : index
    %c0_5 = arith.constant 0 : index
    %5 = vector.load %arg3[%c0_4, %c0_5] : memref<1x96xf32, #tpu.memory_space<vmem>>, vector<1x96xf32>
    %6 = vector.broadcast %5 : vector<1x96xf32> to vector<8x96xf32>
    %7 = arith.addf %4, %6 : vector<8x96xf32>
    %8 = vector.extract_strided_slice %7 {offsets = [0, 0], sizes = [8, 8], strides = [1, 1]} : vector<8x96xf32> to vector<8x8xf32>
    %9 = vector.extract_strided_slice %7 {offsets = [0, 8], sizes = [8, 8], strides = [1, 1]} : vector<8x96xf32> to vector<8x8xf32>
    %10 = vector.extract_strided_slice %7 {offsets = [0, 16], sizes = [8, 8], strides = [1, 1]} : vector<8x96xf32> to vector<8x8xf32>
    %11 = vector.extract_strided_slice %7 {offsets = [0, 24], sizes = [8, 8], strides = [1, 1]} : vector<8x96xf32> to vector<8x8xf32>
    %12 = vector.shape_cast %8 : vector<8x8xf32> to vector<1x8x8xf32>
    %13 = vector.shape_cast %9 : vector<8x8xf32> to vector<1x8x8xf32>
    %14 = vector.shape_cast %10 : vector<8x8xf32> to vector<1x8x8xf32>
    %15 = vector.shape_cast %11 : vector<8x8xf32> to vector<1x8x8xf32>
    %16 = tpu.concatenate %12, %13, %14, %15 in 0 : vector<1x8x8xf32>, vector<1x8x8xf32>, vector<1x8x8xf32>, vector<1x8x8xf32> -> vector<4x8x8xf32>
    %17 = arith.truncf %16 : vector<4x8x8xf32> to vector<4x8x8xbf16>
    %18 = vector.extract_strided_slice %7 {offsets = [0, 32], sizes = [8, 8], strides = [1, 1]} : vector<8x96xf32> to vector<8x8xf32>
    %19 = vector.extract_strided_slice %7 {offsets = [0, 40], sizes = [8, 8], strides = [1, 1]} : vector<8x96xf32> to vector<8x8xf32>
    %20 = vector.extract_strided_slice %7 {offsets = [0, 48], sizes = [8, 8], strides = [1, 1]} : vector<8x96xf32> to vector<8x8xf32>
    %21 = vector.extract_strided_slice %7 {offsets = [0, 56], sizes = [8, 8], strides = [1, 1]} : vector<8x96xf32> to vector<8x8xf32>
    %22 = vector.shape_cast %18 : vector<8x8xf32> to vector<1x8x8xf32>
    %23 = vector.shape_cast %19 : vector<8x8xf32> to vector<1x8x8xf32>
    %24 = vector.shape_cast %20 : vector<8x8xf32> to vector<1x8x8xf32>
    %25 = vector.shape_cast %21 : vector<8x8xf32> to vector<1x8x8xf32>
    %26 = tpu.concatenate %22, %23, %24, %25 in 0 : vector<1x8x8xf32>, vector<1x8x8xf32>, vector<1x8x8xf32>, vector<1x8x8xf32> -> vector<4x8x8xf32>
    %27 = arith.truncf %26 : vector<4x8x8xf32> to vector<4x8x8xbf16>
    %28 = vector.extract_strided_slice %7 {offsets = [0, 64], sizes = [8, 8], strides = [1, 1]} : vector<8x96xf32> to vector<8x8xf32>
    %29 = vector.extract_strided_slice %7 {offsets = [0, 72], sizes = [8, 8], strides = [1, 1]} : vector<8x96xf32> to vector<8x8xf32>
    %30 = vector.extract_strided_slice %7 {offsets = [0, 80], sizes = [8, 8], strides = [1, 1]} : vector<8x96xf32> to vector<8x8xf32>
    %31 = vector.extract_strided_slice %7 {offsets = [0, 88], sizes = [8, 8], strides = [1, 1]} : vector<8x96xf32> to vector<8x8xf32>
    %32 = vector.shape_cast %28 : vector<8x8xf32> to vector<1x8x8xf32>
    %33 = vector.shape_cast %29 : vector<8x8xf32> to vector<1x8x8xf32>
    %34 = vector.shape_cast %30 : vector<8x8xf32> to vector<1x8x8xf32>
    %35 = vector.shape_cast %31 : vector<8x8xf32> to vector<1x8x8xf32>
    %36 = tpu.concatenate %32, %33, %34, %35 in 0 : vector<1x8x8xf32>, vector<1x8x8xf32>, vector<1x8x8xf32>, vector<1x8x8xf32> -> vector<4x8x8xf32>
    %37 = arith.truncf %36 : vector<4x8x8xf32> to vector<4x8x8xbf16>
    "tpu.trace_start"() <{level = 10 : i32, message = "hqd,hkd->hqk"}> : () -> ()
    %cst_6 = arith.constant dense<0.000000e+00> : vector<4x8x8xf32>
    %38 = tpu.matmul %17, %27, %cst_6 {dimension_numbers = #tpu.dot_dimension_numbers<[2], [2], [1], [1], [0, 0, 0, 1, 1, 1], [0], [0]>} : vector<4x8x8xbf16>, vector<4x8x8xbf16>, vector<4x8x8xf32> -> vector<4x8x8xf32>
    "tpu.trace_stop"() : () -> ()
    %cst_7 = arith.constant dense<0xFF800000> : vector<4x8xf32>
    %39 = vector.multi_reduction <maximumf>, %38, %cst_7 [2] : vector<4x8x8xf32> to vector<4x8xf32>
    %40 = vector.shape_cast %39 : vector<4x8xf32> to vector<4x8x1xf32>
    %41 = vector.broadcast %40 : vector<4x8x1xf32> to vector<4x8x8xf32>
    %42 = arith.subf %38, %41 : vector<4x8x8xf32>
    %43 = math.exp %42 : vector<4x8x8xf32>
    %cst_8 = arith.constant dense<0.000000e+00> : vector<4x8xf32>
    %44 = vector.multi_reduction <add>, %43, %cst_8 [2] : vector<4x8x8xf32> to vector<4x8xf32>
    %45 = vector.shape_cast %44 : vector<4x8xf32> to vector<4x8x1xf32>
    %46 = tpu.reciprocal %45 {approx = true} : vector<4x8x1xf32> -> vector<4x8x1xf32>
    %47 = vector.broadcast %46 : vector<4x8x1xf32> to vector<4x8x8xf32>
    %48 = arith.mulf %43, %47 : vector<4x8x8xf32>
    %49 = arith.truncf %48 : vector<4x8x8xf32> to vector<4x8x8xbf16>
    "tpu.trace_start"() <{level = 10 : i32, message = "hqk,hkd->hqd"}> : () -> ()
    %cst_9 = arith.constant dense<0.000000e+00> : vector<4x8x8xf32>
    %50 = tpu.matmul %49, %37, %cst_9 {dimension_numbers = #tpu.dot_dimension_numbers<[2], [1], [1], [2], [0, 0, 0, 1, 1, 2], [0], [0]>} : vector<4x8x8xbf16>, vector<4x8x8xbf16>, vector<4x8x8xf32> -> vector<4x8x8xf32>
    "tpu.trace_stop"() : () -> ()
    %c0_10 = arith.constant 0 : index
    %c0_11 = arith.constant 0 : index
    %c0_12 = arith.constant 0 : index
    %51 = vector.load %arg4[%c0_10, %c0_11, %c0_12] : memref<4x8x32xbf16, #tpu.memory_space<vmem>>, vector<4x8x32xbf16>
    %cst_13 = arith.constant 0.000000e+00 : f32
    %52 = vector.broadcast %cst_13 : f32 to vector<8x32xf32>
    %53 = vector.extract_strided_slice %50 {offsets = [0, 0, 0], sizes = [1, 8, 8], strides = [1, 1, 1]} : vector<4x8x8xf32> to vector<1x8x8xf32>
    %54 = vector.shape_cast %53 : vector<1x8x8xf32> to vector<8x8xf32>
    %55 = arith.truncf %54 : vector<8x8xf32> to vector<8x8xbf16>
    %56 = vector.extract_strided_slice %51 {offsets = [0, 0, 0], sizes = [1, 8, 32], strides = [1, 1, 1]} : vector<4x8x32xbf16> to vector<1x8x32xbf16>
    %57 = vector.shape_cast %56 : vector<1x8x32xbf16> to vector<8x32xbf16>
    %cst_14 = arith.constant dense<0.000000e+00> : vector<8x32xf32>
    %58 = tpu.matmul %55, %57, %cst_14 {dimension_numbers = #tpu.dot_dimension_numbers<[1], [0], [0], [1], [0, 0, 1, 1], [], []>} : vector<8x8xbf16>, vector<8x32xbf16>, vector<8x32xf32> -> vector<8x32xf32>
    %59 = arith.addf %52, %58 : vector<8x32xf32>
    %60 = vector.extract_strided_slice %50 {offsets = [1, 0, 0], sizes = [1, 8, 8], strides = [1, 1, 1]} : vector<4x8x8xf32> to vector<1x8x8xf32>
    %61 = vector.shape_cast %60 : vector<1x8x8xf32> to vector<8x8xf32>
    %62 = arith.truncf %61 : vector<8x8xf32> to vector<8x8xbf16>
    %63 = vector.extract_strided_slice %51 {offsets = [1, 0, 0], sizes = [1, 8, 32], strides = [1, 1, 1]} : vector<4x8x32xbf16> to vector<1x8x32xbf16>
    %64 = vector.shape_cast %63 : vector<1x8x32xbf16> to vector<8x32xbf16>
    %cst_15 = arith.constant dense<0.000000e+00> : vector<8x32xf32>
    %65 = tpu.matmul %62, %64, %cst_15 {dimension_numbers = #tpu.dot_dimension_numbers<[1], [0], [0], [1], [0, 0, 1, 1], [], []>} : vector<8x8xbf16>, vector<8x32xbf16>, vector<8x32xf32> -> vector<8x32xf32>
    %66 = arith.addf %59, %65 : vector<8x32xf32>
    %67 = vector.extract_strided_slice %50 {offsets = [2, 0, 0], sizes = [1, 8, 8], strides = [1, 1, 1]} : vector<4x8x8xf32> to vector<1x8x8xf32>
    %68 = vector.shape_cast %67 : vector<1x8x8xf32> to vector<8x8xf32>
    %69 = arith.truncf %68 : vector<8x8xf32> to vector<8x8xbf16>
    %70 = vector.extract_strided_slice %51 {offsets = [2, 0, 0], sizes = [1, 8, 32], strides = [1, 1, 1]} : vector<4x8x32xbf16> to vector<1x8x32xbf16>
    %71 = vector.shape_cast %70 : vector<1x8x32xbf16> to vector<8x32xbf16>
    %cst_16 = arith.constant dense<0.000000e+00> : vector<8x32xf32>
    %72 = tpu.matmul %69, %71, %cst_16 {dimension_numbers = #tpu.dot_dimension_numbers<[1], [0], [0], [1], [0, 0, 1, 1], [], []>} : vector<8x8xbf16>, vector<8x32xbf16>, vector<8x32xf32> -> vector<8x32xf32>
    %73 = arith.addf %66, %72 : vector<8x32xf32>
    %74 = vector.extract_strided_slice %50 {offsets = [3, 0, 0], sizes = [1, 8, 8], strides = [1, 1, 1]} : vector<4x8x8xf32> to vector<1x8x8xf32>
    %75 = vector.shape_cast %74 : vector<1x8x8xf32> to vector<8x8xf32>
    %76 = arith.truncf %75 : vector<8x8xf32> to vector<8x8xbf16>
    %77 = vector.extract_strided_slice %51 {offsets = [3, 0, 0], sizes = [1, 8, 32], strides = [1, 1, 1]} : vector<4x8x32xbf16> to vector<1x8x32xbf16>
    %78 = vector.shape_cast %77 : vector<1x8x32xbf16> to vector<8x32xbf16>
    %cst_17 = arith.constant dense<0.000000e+00> : vector<8x32xf32>
    %79 = tpu.matmul %76, %78, %cst_17 {dimension_numbers = #tpu.dot_dimension_numbers<[1], [0], [0], [1], [0, 0, 1, 1], [], []>} : vector<8x8xbf16>, vector<8x32xbf16>, vector<8x32xf32> -> vector<8x32xf32>
    %80 = arith.addf %73, %79 : vector<8x32xf32>
    %c0_18 = arith.constant 0 : index
    %c0_19 = arith.constant 0 : index
    %81 = vector.load %arg5[%c0_18, %c0_19] : memref<1x32xf32, #tpu.memory_space<vmem>>, vector<1x32xf32>
    %82 = vector.broadcast %81 : vector<1x32xf32> to vector<8x32xf32>
    %83 = arith.addf %80, %82 : vector<8x32xf32>
    %c0_20 = arith.constant 0 : index
    %c0_21 = arith.constant 0 : index
    %c0_22 = arith.constant 0 : index
    %84 = vector.load %arg6[%c0_20, %c0_21, %c0_22] : memref<1x8x32xf32, #tpu.memory_space<vmem>>, vector<1x8x32xf32>
    %85 = vector.shape_cast %84 : vector<1x8x32xf32> to vector<8x32xf32>
    %86 = vector.shape_cast %83 : vector<8x32xf32> to vector<1x8x32xf32>
    tpu.vector_store %arg6[%c0_20, %c0_21, %c0_22], %86 {strides = array<i32>} : memref<1x8x32xf32, #tpu.memory_space<vmem>>, vector<1x8x32xf32>,
    return
  }
  func.func @transform_0(%arg0: i32) -> (i32, i32, i32) {
    %c0_i32 = arith.constant 0 : i32
    %c0_i32_0 = arith.constant 0 : i32
    %c0_i32_1 = arith.constant 0 : i32
    return %arg0, %c0_i32, %c0_i32_0 : i32, i32, i32
  }
  func.func @transform_1(%arg0: i32) -> (i32, i32) {
    %c0_i32 = arith.constant 0 : i32
    %c0_i32_0 = arith.constant 0 : i32
    %c0_i32_1 = arith.constant 0 : i32
    return %c0_i32, %c0_i32_0 : i32, i32
  }
  func.func @transform_2(%arg0: i32) -> (i32, i32) {
    %c0_i32 = arith.constant 0 : i32
    %c0_i32_0 = arith.constant 0 : i32
    %c0_i32_1 = arith.constant 0 : i32
    return %c0_i32, %c0_i32_0 : i32, i32
  }
  func.func @transform_3(%arg0: i32) -> (i32, i32, i32) {
    %c0_i32 = arith.constant 0 : i32
    %c0_i32_0 = arith.constant 0 : i32
    %c0_i32_1 = arith.constant 0 : i32
    %c0_i32_2 = arith.constant 0 : i32
    return %c0_i32, %c0_i32_0, %c0_i32_1 : i32, i32, i32
  }
  func.func @transform_4(%arg0: i32) -> (i32, i32) {
    %c0_i32 = arith.constant 0 : i32
    %c0_i32_0 = arith.constant 0 : i32
    %c0_i32_1 = arith.constant 0 : i32
    return %c0_i32, %c0_i32_0 : i32, i32
  }
  func.func @transform_5(%arg0: i32) -> (i32, i32, i32) {
    %c0_i32 = arith.constant 0 : i32
    %c0_i32_0 = arith.constant 0 : i32
    %c0_i32_1 = arith.constant 0 : i32
    return %arg0, %c0_i32, %c0_i32_0 : i32, i32, i32
  }
}

</mosaic_0001>

<bundles_post_ra>
// kernel: tpu_custom_call.1
= control target key start
LH: loop header
LB: loop body
LE: loop exit
PB: predicated region body
PF: predicated region fallthrough
CT: control target
= control target key end

     0   :  { %10 = vsyncpa [#allocation3], 0  ;;  %s1293_s0 = inlined_call_operand.hbm [shape: f32[2,8,32], index: 0, kind: input, shape index: {}]   ;;  %s1294_s1 = inlined_call_operand.hbm [shape: bf16[32,96], index: 1, kind: input, shape index: {}]   ;;  %s1295_s2 = inlined_call_operand.vmem [shape: f32[1,96], index: 2, kind: input, shape index: {}]   ;;  %s1296_s3 = inlined_call_operand.hbm [shape: bf16[4,8,32], index: 3, kind: input, shape index: {}]   ;;  %s1297_s4 = inlined_call_operand.vmem [shape: f32[1,32], index: 4, kind: input, shape index: {}]   ;;  %s1298_s5 = inlined_call_operand.hbm [shape: f32[2,8,32], index: 5, kind: output, shape index: {}]  }
   0x1   :  { %12 = vsyncpa [#allocation3 + $0x1], 0 }
   0x2   :  { %13 = vsyncpa [#allocation6], 0 }
   0x3   :  { %14 = vsyncpa [#allocation4], 0 }
   0x4   :  { %16 = vsyncpa [#allocation4 + $0x1], 0  ;;  %s1088_s18 = smov 0   ;;  %s1090_s19 = smov 0  }
   0x5   :  { %s1092_s20 = smov 0   ;;  %s1094_s21 = smov 0  }
   0x6 LB: > { %s174_s24 = sshll.u32 %s1294_s1, 4  ;;  %s1112_s25 = sadd.s32 4294967295, %s1047_s21   ;;  %s1047_s21 = sphi %s1094_s21, %s1309_s21   ;;  %s1043_s20 = sphi %s1092_s20, %s1308_s20   ;;  %s1039_s19 = sphi %s1090_s19, %s1307_s19   ;;  %s1035_s18 = sphi %s1088_s18, %s1306_s18   ;;  %s175_s24 = int_to_ptr.hbm [resolvable:$true] %s174_s24 }
   0x7   : > { %p757_p0 = scmp.ge.s32.totalorder %s1047_s21, 1  ;;  %p43_p1 = scmp.eq.s32.totalorder %s1112_s25, 0 }
   0x8   : > { %p163_p2 = scmp.lt.s32.totalorder %s1047_s21, 3  ;;  %s1049_s27 = smov [#allocation5]  }
   0x9   : > { %s176_s28 = sshll.u32 %s1049_s27, 4  ;;  %s191_s6 = sshll.u32 %s1296_s3, 4  ;;  %s177_s28 = int_to_ptr.vmem [resolvable:$true] %s176_s28  ;;  %s192_s6 = int_to_ptr.hbm [resolvable:$true] %s191_s6 }
   0xa   : > { %p1117_p3 = pnand %p757_p0, %p163_p2  ;;  %s1050_s7 = smov [#allocation7]  }
   0xb   : > { %s193_s8 = sshll.u32 %s1050_s7, 4  ;;  %s1051_s9 = smov 64   ;;  %s194_s8 = int_to_ptr.vmem [resolvable:$true] %s193_s8 }
   0xc   : > { %p807_p4 = pneg %p1117_p3  ;;  %s1052_s10 = smov 4  }
   0xd   : > { %s756_s11 = sadd.s32 4294967294, %s1047_s21   ;;  %s1131_s12 = sadd.s32 1, %s1047_s21  }
   0xe   : > { %p808_p6 = pnand %p807_p4, %p43_p1  ;;  %s26_s13 = ssub.s32 %s1047_s21, %s1131_s12 }
   0xf   : > { %s29_s14 = sadd.s32 1, %s1043_s20  ;;  %p27_p7 = scmp.eq.s32.totalorder %s26_s13, 0 }
  0x10   : > { %810 = dma.hbm_to_vmem [thread:$0]  (!%p808_p6), %s175_s24, 256, %s177_s28, [#allocation6], %s1051_s9, %s1051_s9, %s1052_s10  }
  0x11   : > { %813 = dma.hbm_to_vmem [thread:$0]  (!%p808_p6), %s192_s6, 256, %s194_s8, [#allocation6], %s1051_s9, %s1051_s9, %s1052_s10  }
  0x12   : > { %p36_p8 = scmp.ne.s32.totalorder %s1043_s20, %s1039_s19  ;;  %p37_p9 = scmp.eq.s32.totalorder %s1047_s21, 0 }
  0x13   : > { %p42_p10 = scmp.ne.s32.totalorder %s1039_s19, %s1035_s18  ;;  %p150_p13 = scmp.eq.s32.totalorder %s1112_s25, 1 }
  0x14   : > { %s1142_s15 = scalar_select %p27_p7, %s1043_s20, %s29_s14  }
  0x15   : > { %p1144_p11 = por %p37_p9, %p36_p8  ;;  %p1150_p12 = por %p43_p1, %p42_p10 }
  0x16   : > { %p156_p0 = scmp.eq.s32.totalorder %s756_s11, 1  ;;  %p824_p2 = scmp.lt.s32.totalorder %s1047_s21, 2 }
  0x17   : > { %s210_s22 = sand.u32 1, %s1043_s20   ;;  %p1157_p4 = por %p150_p13, %p36_p8 }
  0x18   : > { %p1161_p6 = por %p156_p0, %p42_p10  ;;  %s761_s27 = sshll.u32 %s210_s22, 3 }
  0x19   : > { %s762_s28 = sshll.u32 %s1047_s21, 3  ;;  %s214_s7 = scalar_lea.vmem [#allocation2], %s761_s27 }
  0x1a   : > { %s218_s6 = scalar_lea.hbm %s1293_s0, %s762_s28  ;;  %s222_s8 = sshll.u32 %s214_s7, 4  ;;  %s223_s8 = int_to_ptr.vmem [resolvable:$true] %s222_s8 }
  0x1b   : > { %s220_s9 = sshll.u32 %s218_s6, 4  ;;  %p1171_p7 = pnand %p824_p2, %p1144_p11  ;;  %s221_s9 = int_to_ptr.hbm [resolvable:$true] %s220_s9 }
  0x1c   : > { %s211_s11 = scalar_lea.sflag [#allocation3], %s210_s22  ;;  %s947_s13 = sshra.s32 %s221_s9, 4  ;;  %s948_s13 = int_to_ptr.hbm [resolvable:$true] %s947_s13 }
  0x1d   : > { %s949_s14 = scalar_lea.hbm %s948_s13, 8  ;;  %p951_p9 = pneg %p1171_p7 }
  0x1e   : > { %p950_p8 = scmp.ne.s32.totalorder %s948_s13, %s949_s14  ;;  %s954_s29 = scalar_lea.hbm %s1293_s0, 16 }
  0x1f   : > { %p955_p11 = scmp.lt.s32.totalorder %s948_s13, %s1293_s0  ;;  %p956_p0 = scmp.lt.s32.totalorder %s954_s29, %s949_s14 }
  0x20   : > { %p952_p10 = pnand %p951_p9, %p950_p8 }
  0x21   : > { %p957_p2 = por %p956_p0, %p955_p11 }
  0x22   : > { %p953_p13 = pneg %p952_p10 }
  0x24   : > { %p958_p5 = pnand %p957_p2, %p953_p13 }
  0x26   : > { %961 = shalt.err (!%p958_p5)
}
  0x27   : > { %817 = dma.hbm_to_vmem [thread:$0]  (!%p1171_p7), %s221_s9, 128, %s223_s8, %s211_s11  }
  0x28   : > { %231 = sbr.rel (%p1117_p3) target bundleno = 1095 (0x447), region = 40  ;;  %s1188_s22 = sand.u32 (!%p1117_p3), 1, %s1039_s19  }
  0x29   : > { %s764_s6 = sshll.u32 (!%p1117_p3), %s1188_s22, 3  ;;  %s234_s7 = scalar_lea.sflag (!%p1117_p3), [#allocation3], %s1188_s22 }
  0x2a   : > { %s237_s13 = scalar_lea.vmem (!%p1117_p3), [#allocation2], %s764_s6 }
  0x2d   : > { %1022 = dma.done.wait (%p1150_p12), %s234_s7, 128  }
  0x2e   : > { %1024 = vsyncadd (%p1150_p12), %s234_s7, 4294967168 }
  0x2f   : > { %1026 = dma.done.wait (%p43_p1), [#allocation6], 512  }
  0x30   : > { %1028 = vsyncadd (%p43_p1), [#allocation6], 4294966784  ;;  %v794_v0 = vld [vmem:[#allocation5 + $0x8] sm:$0xff]  ;;  %v793_v1 = vld [vmem:[#allocation5] sm:$0xff]  ;;  %vm298_vm0 = vcmask 261120   ;;  %s1053_s17 = smov 104  }
  0x31   : > { %308 = vmatpush.bf16.msra.mxu0 %v794_v0  ;;  %v276_v2 = vld [vmem:[%s237_s13] sm:$0xff]  ;;  %s1054_s9 = smov 112   ;;  %s1055_s10 = smov 120   ;;  %vm334_vm1 = vcmask 64512   ;;  %vm479_vm2 = vcmask 1043456  }
  0x32   : > { %v277_v3 = vpack.c.bf16 %v276_v2, %v276_v2  ;;  %v869_v4 = vld [vmem:[%s1295_s2] ss:$0 sm:$0xff]  ;;  %s1056_s11 = smov 96   ;;  %s1057_s14 = smov 64  }
  0x33   : > { %s790_s27 = sshll.u32 %s1112_s25, 3  ;;  %s274_s13 = scalar_lea.vmem [#allocation8], %s764_s6 }
  0x34   : > { %s662_s30 = scalar_lea.hbm %s1298_s5, %s790_s27  ;;  %s664_s26 = sshll.u32 %s274_s13, 4  ;;  %s665_s26 = int_to_ptr.vmem [resolvable:$true] %s664_s26 }
  0x35   : > { %309 = vmatpush.bf16.msra.mxu0 %v793_v1  ;;  %s666_s8 = sshll.u32 %s662_s30, 4  ;;  %s652_s25 = scalar_lea.sflag [#allocation4], %s1188_s22  ;;  %s667_s8 = int_to_ptr.hbm [resolvable:$true] %s666_s8 }
  0x36   : > { %s997_s6 = scalar_lea.hbm %s1298_s5, 16 }
  0x38   : > { %776 = vmatmul.msk.bf16.vlgmr.msra.gmra.mxu0 %vm298_vm0, %v277_v3 }
  0xb5   : > { %v311_v5 = vpop.f32.mrf.mxu0 }
  0xb6   : > { %v312_v6 = vadd.f32 %v869_v4, %v311_v5 }
  0xb8   : > { %322 = vrot.lane.b32.xlu1 %v312_v6, %s1053_s17  ;;  %319 = vrot.lane.b32.xlu0 %v312_v6, %s1054_s9  ;;  %v325_v20 = vpack.c.bf16 %v312_v6, %v312_v6  ;;  %s991_s17 = sshra.s32 %s667_s8, 4  ;;  %s992_s17 = int_to_ptr.hbm [resolvable:$true] %s991_s17 }
  0xb9   : > { %s993_s9 = scalar_lea.hbm %s992_s17, 8  ;;  %p998_p12 = scmp.lt.s32.totalorder %s992_s17, %s1298_s5 }
  0xba   : > { %v330_v21 = vunpack.c.l.b16 %v325_v20  ;;  %p994_p1 = scmp.ne.s32.totalorder %s992_s17, %s993_s9  ;;  %p999_p7 = scmp.lt.s32.totalorder %s997_s6, %s993_s9 }
  0xbc   : > { %v1212_v22 = vpack.c.b16 %v330_v21, %v330_v21  ;;  %p995_p3 = pnand %p994_p1, %p1157_p4  ;;  %p1000_p8 = por %p999_p7, %p998_p12 }
  0xbd   : > { %v313_v7 = vpop.f32.mrf.mxu0 }
  0xbe   : > { %p996_p5 = pneg %p995_p3 }
  0xc0   : > { %316 = vrot.lane.b32.xlu0 %v312_v6, %s1055_s10  ;;  %p1001_p9 = pnand %p1000_p8, %p996_p5 }
 0x12a   : > { %v323_v8 = vpop.permute.xlu1 %322  ;;  %v320_v9 = vpop.permute.xlu0 %319 }
 0x12b   : > { %v328_v10 = vpack.c.bf16 %v323_v8, %v323_v8  ;;  %v327_v11 = vpack.c.bf16 %v320_v9, %v320_v9 }
 0x12d   : > { %v403_v12 = vunpack.c.l.b16 %v328_v10  ;;  %v379_v13 = vunpack.c.l.b16 %v327_v11 }
 0x12f   : > { %v1206_v14 = vpack.c.b16 %v403_v12, %v403_v12  ;;  %v380_v15 = vpack.c.b16 %v379_v13, %v379_v13 }
 0x131   : > { %405 = vrot.lane.b32.xlu0 %v1206_v14, %s1056_s11  ;;  %381 = vrot.lane.b32.xlu1 %v380_v15, %s1056_s11 }
 0x132   : > { %v317_v16 = vpop.permute.xlu0 %316 }
 0x133   : > { %v326_v17 = vpack.c.bf16 %v317_v16, %v317_v16 }
 0x135   : > { %v355_v18 = vunpack.c.l.b16 %v326_v17 }
 0x137   : > { %v1209_v19 = vpack.c.b16 %v355_v18, %v355_v18 }
 0x139   : > { %357 = vrot.lane.b32.xlu2 %v1209_v19, %s1056_s11 }
 0x141   : > { %332 = vrot.lane.b32.xlu2 %v1212_v22, %s1056_s11 }
 0x193   : > { %v358_v23 = vpop.permute.xlu2 %357 }
 0x194   : > { %v363_v24 = vsel %vm334_vm1, %v358_v23, 0  ;;  %v559_v23 = vld [vmem:[#allocation7] sm:$0xf] }
 0x195   : > { %372 = vmatpush.bf16.xpose.msra.mxu2 %v363_v24  ;;  %v588_v24 = vsel %vm479_vm2, %v559_v23, 0 }
 0x19b   : > { %v333_v25 = vpop.permute.xlu2 %332 }
 0x19c   : > { %778 = vmatmul.msk.bf16.vlgmr.msra.gmra.mxu2 %vm334_vm1, %v326_v17  ;;  %v339_v26 = vsel %vm334_vm1, %v333_v25, 0  ;;  %v560_v25 = vld [vmem:[#allocation7 + $0x4] sm:$0xf] }
 0x19d   : > { %348 = vmatpush.bf16.xpose.msra.mxu1 %v339_v26  ;;  %v569_v26 = vsel %vm479_vm2, %v560_v25, 0 }
 0x1a3   : > { %v382_v27 = vpop.permute.xlu1 %381  ;;  %v406_v28 = vpop.permute.xlu0 %405 }
 0x1a4   : > { %777 = vmatmul.msk.bf16.vlgmr.msra.gmra.mxu1 %vm334_vm1, %v325_v20  ;;  %v387_v29 = vsel %vm334_vm1, %v382_v27, 0  ;;  %v411_v30 = vsel %vm334_vm1, %v406_v28, 0  ;;  %v561_v27 = vld [vmem:[#allocation7 + $0x8] sm:$0xf] }
 0x1a5   : > { %396 = vmatpush.bf16.xpose.msra.mxu3 %v387_v29  ;;  %420 = vmatpush.bf16.xpose.msrb.mxu0 %v411_v30  ;;  %v608_v28 = vsel %vm479_vm2, %v561_v27, 0  ;;  %v562_v29 = vld [vmem:[#allocation7 + $0xc] sm:$0xf] }
 0x1a6   : > { %v629_v30 = vsel %vm479_vm2, %v562_v29, 0 }
 0x1ac   : > { %779 = vmatmul.msk.bf16.vlgmr.msra.gmra.mxu3 %vm334_vm1, %v327_v11  ;;  %780 = vmatmul.msk.bf16.vlgmr.msrb.gmra.mxu0 %vm334_vm1, %v328_v10 }
 0x21f   : > { %v374_v31 = vpop.f32.mrf.mxu2 }
 0x220   : > { %v429_v32 = vsel %vm334_vm1, %v374_v31, -inf }
 0x221   : > { %430 = vmax.xlane.f32.xlu0 %v429_v32  ;;  %v350_v33 = vpop.f32.mrf.mxu1 }
 0x222   : > { %v426_v34 = vsel %vm334_vm1, %v350_v33, -inf }
 0x223   : > { %427 = vmax.xlane.f32.xlu2 %v426_v34 }
 0x227   : > { %v376_v35 = vpop.f32.mrf.mxu2 }
 0x229   : > { %v352_v36 = vpop.f32.mrf.mxu1  ;;  %v422_v37 = vpop.f32.mrf.mxu0 }
 0x22a   : > { %v435_v38 = vsel %vm334_vm1, %v422_v37, -inf }
 0x22b   : > { %436 = vmax.xlane.f32.xlu2 %v435_v38 }
 0x22f   : > { %v398_v39 = vpop.f32.mrf.mxu3 }
 0x230   : > { %v432_v40 = vsel %vm334_vm1, %v398_v39, -inf }
 0x231   : > { %433 = vmax.xlane.f32.xlu1 %v432_v40  ;;  %v424_v41 = vpop.f32.mrf.mxu0 }
 0x237   : > { %v400_v42 = vpop.f32.mrf.mxu3 }
 0x24a   : > { %517 = vrot.lane.b32.xlu1 %v380_v15, %s1057_s14 }
 0x294   : > { %v431_v43 = vpop.xlane.xlu0 %430 }
 0x295   : > { %v439_v44 = vsub.f32 %v374_v31, %v431_v43 }
 0x296   : > { %v428_v45 = vpop.xlane.xlu2 %427 }
 0x297   : > { %v444_v46 = vmul.f32 1.442695, %v439_v44  ;;  %v438_v47 = vsub.f32 %v350_v33, %v428_v45 }
 0x299   : > { %871 = vpow2.f32 %v444_v46  ;;  %v442_v48 = vmul.f32 1.442695, %v438_v47 }
 0x29b   : > { %873 = vpow2.f32 %v442_v48 }
 0x29e   : > { %v437_v49 = vpop.xlane.xlu2 %436 }
 0x29f   : > { %v872_v50 = vpop.eup %871  ;;  %v441_v51 = vsub.f32 %v422_v37, %v437_v49 }
 0x2a0   : > { %v453_v52 = vsel %vm334_vm1, %v872_v50, 0.0 }
 0x2a1   : > { %v874_v53 = vpop.eup %873  ;;  %v448_v54 = vmul.f32 1.442695, %v441_v51  ;;  %454 = vadd.xlane.f32.xlu0 %v453_v52 }
 0x2a2   : > { %v450_v55 = vsel %vm334_vm1, %v874_v53, 0.0 }
 0x2a3   : > { %875 = vpow2.f32 %v448_v54  ;;  %451 = vadd.xlane.f32.xlu2 %v450_v55 }
 0x2a4   : > { %v434_v56 = vpop.xlane.xlu1 %433 }
 0x2a5   : > { %v440_v57 = vsub.f32 %v398_v39, %v434_v56 }
 0x2a7   : > { %v446_v58 = vmul.f32 1.442695, %v440_v57 }
 0x2a9   : > { %v876_v59 = vpop.eup %875  ;;  %877 = vpow2.f32 %v446_v58 }
 0x2aa   : > { %v459_v60 = vsel %vm334_vm1, %v876_v59, 0.0 }
 0x2ab   : > { %460 = vadd.xlane.f32.xlu2 %v459_v60 }
 0x2af   : > { %v878_v61 = vpop.eup %877 }
 0x2b0   : > { %v456_v62 = vsel %vm334_vm1, %v878_v61, 0.0 }
 0x2b1   : > { %457 = vadd.xlane.f32.xlu1 %v456_v62 }
 0x2b5   : > { %474 = vrot.lane.b32.xlu0 %v1212_v22, %s1057_s14 }
 0x2bc   : > { %v518_v63 = vpop.permute.xlu1 %517 }
 0x2bd   : > { %v523_v0 = vsel %vm479_vm2, %v518_v63, 0 }
 0x2be   : > { %532 = vmatpush.bf16.msrb.mxu3 %v523_v0 }
 0x2c2   : > { %617 = vmatpush.bf16.msra.mxu3 %v608_v28 }
 0x2c3   : > { %496 = vrot.lane.b32.xlu2 %v1209_v19, %s1057_s14 }
 0x2ca   : > { %538 = vrot.lane.b32.xlu1 %v1206_v14, %s1057_s14 }
 0x314   : > { %v455_v2 = vpop.xlane.xlu0 %454 }
 0x315   : > { %879 = vrcp.f32 %v455_v2 }
 0x316   : > { %v452_v1 = vpop.xlane.xlu2 %451 }
 0x317   : > { %881 = vrcp.f32 %v452_v1 }
 0x31b   : > { %v880_v4 = vpop.eup %879 }
 0x31c   : > { %v467_v7 = vmul.f32 %v880_v4, %v872_v50  ;;  %v870_v50 = vld [vmem:[%s1297_s4] ss:$0 sm:$0xff] }
 0x31d   : > { %v882_v5 = vpop.eup %881 }
 0x31e   : > { %v461_v3 = vpop.xlane.xlu2 %460  ;;  %v466_v8 = vmul.f32 %v882_v5, %v874_v53  ;;  %v471_v13 = vpack.c.bf16 %v467_v7, %v467_v7 }
 0x320   : > { %v470_v14 = vpack.c.bf16 %v466_v8, %v466_v8 }
 0x324   : > { %v458_v6 = vpop.xlane.xlu1 %457 }
 0x325   : > { %883 = vrcp.f32 %v458_v6 }
 0x326   : > { %v497_v9 = vpop.permute.xlu2 %496  ;;  %885 = vrcp.f32 %v461_v3 }
 0x327   : > { %v475_v10 = vpop.permute.xlu0 %474  ;;  %v502_v11 = vsel %vm479_vm2, %v497_v9, 0 }
 0x328   : > { %511 = vmatpush.bf16.msrb.mxu2 %v502_v11  ;;  %v481_v12 = vsel %vm479_vm2, %v475_v10, 0 }
 0x329   : > { %490 = vmatpush.bf16.msrb.mxu1 %v481_v12 }
 0x32b   : > { %v884_v15 = vpop.eup %883  ;;  %782 = vmatmul.msk.bf16.vlgmr.msrb.gmra.mxu2 %vm334_vm1, %v471_v13 }
 0x32c   : > { %v468_v16 = vmul.f32 %v884_v15, %v878_v61  ;;  %781 = vmatmul.msk.bf16.vlgmr.msrb.gmra.mxu1 %vm334_vm1, %v470_v14  ;;  %v886_v18 = vpop.eup %885  ;;  %597 = vmatpush.bf16.msra.mxu2 %v588_v24 }
 0x32d   : > { %v469_v19 = vmul.f32 %v886_v18, %v876_v59  ;;  %578 = vmatpush.bf16.msra.mxu1 %v569_v26 }
 0x32e   : > { %v472_v17 = vpack.c.bf16 %v468_v16, %v468_v16 }
 0x32f   : > { %v473_v22 = vpack.c.bf16 %v469_v19, %v469_v19 }
 0x330   : > { %783 = vmatmul.msk.bf16.vlgmr.msrb.gmra.mxu3 %vm334_vm1, %v472_v17 }
 0x33c   : > { %v539_v20 = vpop.permute.xlu1 %538 }
 0x33d   : > { %v544_v21 = vsel %vm479_vm2, %v539_v20, 0 }
 0x33e   : > { %553 = vmatpush.bf16.msra.mxu0 %v544_v21 }
 0x341   : > { %784 = vmatmul.msk.bf16.vlgmr.msra.gmra.mxu0 %vm334_vm1, %v473_v22 }
 0x342   : > { %638 = vmatpush.bf16.msrb.mxu0 %v629_v30 }
 0x3a9   : > { %v492_v31 = vpop.f32.mrf.mxu1 }
 0x3aa   : > { %v563_v32 = vpack.c.bf16 %v492_v31, %v492_v31 }
 0x3ac   : > { %786 = vmatmul.msk.bf16.vlgmr.msra.gmra.mxu2 %vm334_vm1, %v563_v32 }
 0x3ae   : > { %v513_v33 = vpop.f32.mrf.mxu2 }
 0x3af   : > { %v564_v34 = vpack.c.bf16 %v513_v33, %v513_v33 }
 0x3b1   : > { %v494_v35 = vpop.f32.mrf.mxu1  ;;  %785 = vmatmul.msk.bf16.vlgmr.msra.gmra.mxu1 %vm334_vm1, %v564_v34 }
 0x3b3   : > { %v534_v36 = vpop.f32.mrf.mxu3 }
 0x3b4   : > { %v603_v37 = vpack.c.bf16 %v534_v36, %v534_v36 }
 0x3b6   : > { %v515_v38 = vpop.f32.mrf.mxu2  ;;  %787 = vmatmul.msk.bf16.vlgmr.msra.gmra.mxu3 %vm334_vm1, %v603_v37 }
 0x3bb   : > { %v536_v39 = vpop.f32.mrf.mxu3 }
 0x3be   : > { %v555_v40 = vpop.f32.mrf.mxu0 }
 0x3bf   : > { %v624_v41 = vpack.c.bf16 %v555_v40, %v555_v40 }
 0x3c1   : > { %788 = vmatmul.msk.bf16.vlgmr.msrb.gmra.mxu0 %vm334_vm1, %v624_v41 }
 0x3c6   : > { %v557_v42 = vpop.f32.mrf.mxu0 }
 0x42e   : > { %v580_v43 = vpop.f32.mrf.mxu1 }
 0x42f   : > { %v599_v44 = vpop.f32.mrf.mxu2 }
 0x430   : > { %v600_v48 = vadd.f32 %v599_v44, %v580_v43 }
 0x436   : > { %v582_v45 = vpop.f32.mrf.mxu1 }
 0x437   : > { %v601_v46 = vpop.f32.mrf.mxu2 }
 0x439   : > { %v619_v47 = vpop.f32.mrf.mxu3 }
 0x43a   : > { %v623_v49 = vadd.f32 %v619_v47, %v600_v48 }
 0x43e   : > { %v640_v51 = vpop.f32.mrf.mxu0 }
 0x43f   : > { %v644_v52 = vadd.f32 %v640_v51, %v623_v49 }
 0x441   : > { %v649_v53 = vadd.f32 %v870_v50, %v644_v52  ;;  %v621_v54 = vpop.f32.mrf.mxu3 }
 0x443   : > { %650 = vst.msk [vmem:[%s274_s13] sm:$0xff] %vm298_vm0, %v649_v53 }
 0x444   : > { %1004 = shalt.err (!%p1001_p9)
}
 0x445   : > { %805 = dma.vmem_to_hbm [thread:$0]  (%p1157_p4), %s665_s26, 128, %s667_s8, %s652_s25  }
 0x446   : > { %v642_v55 = vpop.f32.mrf.mxu0 }
 0x447 PF: > { %s678_s22 = sand.u32 1, %s1035_s18   ;;  %p1305_p10 = scmp.ge.s32.totalorder %s1047_s21, 2 }
 0x448   : > { %s679_s28 = scalar_lea.sflag [#allocation4], %s678_s22 }
 0x449   : > { %p819_p13 = pnand %p1305_p10, %p1161_p6 }
 0x44b   : > { %p820_p11 = pneg %p819_p13 }
 0x44d   : > { %1030 = dma.done.wait (%p820_p11), %s679_s28, 128  }
 0x44e   : > { %1032 = vsyncadd (%p820_p11), %s679_s28, 4294967168  ;;  %p19_p0 = scmp.ge.s32.totalorder %s1131_s12, 4   ;;  %s1306_s18 = smov %s1039_s19 }
 0x44f   : > { %s1307_s19 = smov %s1043_s20  ;;  %s1308_s20 = smov %s1142_s15 }
 0x450   : > { %s1309_s21 = smov %s1131_s12  ;;  %21 = sbr.rel (!%p19_p0) target bundleno = 6 (0x6), region = 93 }
 0x455   :  { %685 = vsyncpa [#allocation3], 1 }
 0x456   :  { %687 = vsyncpa [#allocation3 + $0x1], 1 }
 0x457   :  { %688 = vsyncpa [#allocation6], 1 }
 0x458   :  { %689 = vsyncpa [#allocation4], 1 }
 0x459   :  { %691 = vsyncpa [#allocation4 + $0x1], 1 }

</bundles_post_ra>
